<compile_context>
chip_gen: v7x
topology: tpu7x:2x2x1
jax: 0.10.0
libtpu: 0.0.40
codegen_flags: <defaults>
</compile_context>

<pallas_src>
import functools

import jax
import jax.numpy as jnp
import numpy as np
from jax.experimental import pallas as pl
from jax.experimental.pallas import tpu as pltpu


def _shift_hi(a, s):
    # out[:, j] = a[:, j - s] for j >= s, zeros elsewhere.
    z = jnp.zeros((a.shape[0], s), a.dtype)
    return jnp.concatenate([z, a[:, : a.shape[1] - s]], axis=1)


def _shift_lo(a, s):
    # out[:, j] = a[:, j + s] for j < cols - s, zeros elsewhere.
    z = jnp.zeros((a.shape[0], s), a.dtype)
    return jnp.concatenate([a[:, s:], z], axis=1)


def _sab_kernel(gamma_ref, x_ref, wq_ref, bq_ref, wk_ref, bk_ref, wv_ref,
                bv_ref, o_ref, *, img_w, tile_q):
    C = x_ref.shape[1]
    C8 = bq_ref.shape[0]

    t = pl.program_id(1)
    q0 = pl.multiple_of(t * tile_q, tile_q)

    xb = x_ref.at[0]                      # (C, N) view of this batch element
    x_full = xb[...]                      # keys / values see every token
    x_tile = xb[:, pl.ds(q0, tile_q)]     # (C, TQ) query tile (also the residual)

    # ---- query branch: (1,3) conv along W on the tile, BN folded, ReLU ----
    # One stacked matmul for the 3 taps, then shift the per-tap outputs along
    # the token (lane) axis; image-row edges are masked.  tile_q % img_w == 0,
    # so w-position within a row is col % img_w.
    tq_all = jnp.dot(wq_ref[...], x_tile, preferred_element_type=jnp.float32)  # (3*C8, TQ)
    col = jax.lax.broadcasted_iota(jnp.int32, (1, tile_q), 1)
    w_pos = col % img_w
    has_l = (w_pos > 0).astype(jnp.float32)
    has_r = (w_pos < img_w - 1).astype(jnp.float32)
    q = jnp.maximum(
        tq_all[C8:2 * C8]
        + _shift_hi(tq_all[0:C8], 1) * has_l
        + _shift_lo(tq_all[2 * C8:3 * C8], 1) * has_r
        + bq_ref[...],
        0.0)                              # (C8, TQ)

    # ---- key branch: (3,1) conv along H over all tokens, BN folded, ReLU ----
    # Shifting by a full image row zero-fills exactly the missing top/bottom
    # neighbours, so no extra mask is needed.
    tk_all = jnp.dot(wk_ref[...], x_full, preferred_element_type=jnp.float32)  # (3*C8, N)
    k = jnp.maximum(
        tk_all[C8:2 * C8]
        + _shift_hi(tk_all[0:C8], img_w)
        + _shift_lo(tk_all[2 * C8:3 * C8], img_w)
        + bk_ref[...],
        0.0)                              # (C8, N)

    # ---- value branch: 1x1 conv over all tokens ----
    v = jnp.dot(wv_ref[...], x_full, preferred_element_type=jnp.float32) + bv_ref[...]  # (C, N)

    # ---- attention: keys on sublanes, queries on lanes (no transposes) ----
    # s[m, j] = <k_m, q_j>
    s = jax.lax.dot_general(k, q, dimension_numbers=(((0,), (0,)), ((), ())),
                            preferred_element_type=jnp.float32)        # (N, TQ)
    m = jnp.max(s, axis=0, keepdims=True)                              # (1, TQ)
    p = jnp.exp(s - m)                                                 # (N, TQ), f32 (v5e-safe)
    denom = jnp.sum(p, axis=0, keepdims=True)                          # (1, TQ)

    # Deferred normalization: un-normalized V @ P on the MXU in bf16 with f32
    # accumulation, then one scale by the EUP reciprocal.
    w_un = jax.lax.dot_general(v.astype(jnp.bfloat16), p.astype(jnp.bfloat16),
                               dimension_numbers=(((1,), (0,)), ((), ())),
                               preferred_element_type=jnp.float32)     # (C, TQ)
    inv = pl.reciprocal(denom, approx=True)                            # (1, TQ)

    o_ref[0] = (gamma_ref[0] * (w_un * inv) + x_tile).astype(o_ref.dtype)


def _fold_conv_bn(w_conv, b_conv, bn, eps):
    # w_conv: (C8, C, kh, kw) with kh*kw == 3 taps.  Fold the inference-mode BN
    # affine into the conv and stack taps -> (3*C8, C) for "W_tap @ x" matmuls.
    bn_w, bn_b, bn_m, bn_v = bn
    c8, c = w_conv.shape[0], w_conv.shape[1]
    scale = bn_w / jnp.sqrt(bn_v + eps)                              # (C8,)
    taps = w_conv.reshape(c8, c, 3) * scale[:, None, None]           # (C8, C, 3)
    w_stack = jnp.concatenate([taps[:, :, k] for k in range(3)], axis=0)  # (3*C8, C)
    b_eff = ((b_conv - bn_m) * scale + bn_b).reshape(c8, 1)          # (C8, 1)
    return w_stack, b_eff


def _pick_tile_q(n, w):
    # Prefer a 128-wide (lane-dense) query tile; must divide N and cover whole
    # image rows (tile_q % W == 0) so the W-direction conv stays tile-local.
    for cand in (128, 256, 64, 32, 16, 8):
        if n % cand == 0 and cand % w == 0:
            return cand
    return n


def spatial_attention_block(x, wq, bq, bnq, wk, bk, bnk, wv, bv, gamma, eps=1e-5):
    """x: (B, C, H, W) float32 (PyTorch NCHW). Returns same shape/dtype."""
    B, C, H, W = x.shape
    N = H * W
    C8 = wq.shape[0]

    # Channel-major token layout (B, C, N): a free reshape of NCHW, no transpose.
    x3 = x.reshape(B, C, N)

    wq_stack, bq_col = _fold_conv_bn(wq, bq, bnq, eps)   # (3*C8, C), (C8, 1)
    wk_stack, bk_col = _fold_conv_bn(wk, bk, bnk, eps)
    wv_mat = wv[:, :, 0, 0]                              # (C_out, C_in)
    bv_col = bv.reshape(C, 1)
    gamma_arr = jnp.asarray(gamma, jnp.float32).reshape(1,)

    tile_q = _pick_tile_q(N, W)
    num_tiles = N // tile_q

    kernel = functools.partial(_sab_kernel, img_w=W, tile_q=tile_q)

    out3 = pl.pallas_call(
        kernel,
        out_shape=jax.ShapeDtypeStruct((B, C, N), x.dtype),
        grid=(B, num_tiles),
        in_specs=[
            pl.BlockSpec(memory_space=pltpu.MemorySpace.SMEM),   # gamma scalar
            pl.BlockSpec((1, C, N), lambda b, t: (b, 0, 0)),     # x (full, per batch)
            pl.BlockSpec((3 * C8, C), lambda b, t: (0, 0)),      # Wq taps (BN folded)
            pl.BlockSpec((C8, 1), lambda b, t: (0, 0)),          # bq
            pl.BlockSpec((3 * C8, C), lambda b, t: (0, 0)),      # Wk taps (BN folded)
            pl.BlockSpec((C8, 1), lambda b, t: (0, 0)),          # bk
            pl.BlockSpec((C, C), lambda b, t: (0, 0)),           # Wv
            pl.BlockSpec((C, 1), lambda b, t: (0, 0)),           # bv
        ],
        out_specs=pl.BlockSpec((1, C, tile_q), lambda b, t: (b, 0, t)),
        compiler_params=pltpu.CompilerParams(
            dimension_semantics=("parallel", "parallel"),
            # Tiny working set; stay well under the v7x 32 MiB scoped default
            # (64 MiB physical) while keeping the limit explicit.
            vmem_limit_bytes=32 * 1024 * 1024),
    )(gamma_arr, x3, wq_stack, bq_col, wk_stack, bk_col, wv_mat, bv_col)

    return out3.reshape(B, C, H, W)


def reference(x, wq, bq, bnq, wk, bk, bnk, wv, bv, gamma, eps=1e-5):
    """Pure-JAX reference mirroring the PyTorch forward (BN in inference mode)."""
    B, C, H, W = x.shape

    def conv(xx, w, b, pad):
        y = jax.lax.conv_general_dilated(
            xx, w, (1, 1), pad, dimension_numbers=('NCHW', 'OIHW', 'NCHW'))
        return y + b[None, :, None, None]

    def bn_relu(y, bn):
        w_, b_, m_, v_ = bn
        y = ((y - m_[None, :, None, None]) / jnp.sqrt(v_[None, :, None, None] + eps)
             * w_[None, :, None, None] + b_[None, :, None, None])
        return jnp.maximum(y, 0.0)

    q = bn_relu(conv(x, wq, bq, ((0, 0), (1, 1))), bnq)
    k = bn_relu(conv(x, wk, bk, ((1, 1), (0, 0))), bnk)
    v = conv(x, wv, bv, ((0, 0), (0, 0)))

    pq = q.reshape(B, -1, H * W).transpose(0, 2, 1)        # (B, N, C8)
    pk = k.reshape(B, -1, H * W)                           # (B, C8, N)
    aff = jax.nn.softmax(pq @ pk, axis=-1)                 # (B, N, N)
    pv = v.reshape(B, -1, H * W)                           # (B, C, N)
    weights = pv @ aff.transpose(0, 2, 1)                  # (B, C, N)
    return gamma * weights.reshape(B, C, H, W) + x


if __name__ == "__main__":
    key = jax.random.PRNGKey(0)
    B, C, H, W = 2, 16, 16, 16
    C8 = C // 8
    ks = jax.random.split(key, 8)

    x = jax.random.normal(ks[0], (B, C, H, W), jnp.float32)

    # conv params (shapes from the module's __init__), deterministic init
    wq = jax.random.normal(ks[1], (C8, C, 1, 3), jnp.float32) * 0.1
    bq = jax.random.normal(ks[2], (C8,), jnp.float32) * 0.1
    wk = jax.random.normal(ks[3], (C8, C, 3, 1), jnp.float32) * 0.1
    bk = jax.random.normal(ks[4], (C8,), jnp.float32) * 0.1
    wv = jax.random.normal(ks[5], (C, C, 1, 1), jnp.float32) * 0.1
    bv = jax.random.normal(ks[6], (C,), jnp.float32) * 0.1

    # BatchNorm (inference-mode) parameters, deterministic & non-trivial
    def bn_params(n):
        i = jnp.arange(n, dtype=jnp.float32)
        return (1.0 + 0.10 * i,     # weight
                0.05 * i,           # bias
                0.02 * i,           # running_mean
                1.0 + 0.03 * i)     # running_var
    bnq = bn_params(C8)
    bnk = bn_params(C8)

    # gamma: nn.Parameter(torch.zeros(1)) at init -> output would equal x.
    # Use a nonzero deterministic value so the attention path is exercised.
    gamma = jnp.float32(0.5)

    out = spatial_attention_block(x, wq, bq, bnq, wk, bk, bnk, wv, bv, gamma)
    out = jax.block_until_ready(out)

    ref = reference(x, wq, bq, bnq, wk, bk, bnk, wv, bv, gamma)
    # Tolerance relaxed vs the pure-f32 version: the PV matmul runs in bf16
    # (f32 accumulate) and the softmax denominator uses the EUP approximate
    # reciprocal, per the performance review.
    np.testing.assert_allclose(np.asarray(out), np.asarray(ref), rtol=1e-2, atol=1e-2)

    print("KERNEL_OK")
</pallas_src>

<mosaic_0001>
module attributes {stable_mosaic.version = 11 : i64} {
  func.func @_sab_kernel(%arg0: i32, %arg1: i32, %arg2: memref<1xf32, #tpu.memory_space<smem>>, %arg3: memref<1x16x256xf32, #tpu.memory_space<vmem>>, %arg4: memref<6x16xf32, #tpu.memory_space<vmem>>, %arg5: memref<2x1xf32, #tpu.memory_space<vmem>>, %arg6: memref<6x16xf32, #tpu.memory_space<vmem>>, %arg7: memref<2x1xf32, #tpu.memory_space<vmem>>, %arg8: memref<16x16xf32, #tpu.memory_space<vmem>>, %arg9: memref<16x1xf32, #tpu.memory_space<vmem>>, %arg10: memref<1x16x128xf32, #tpu.memory_space<vmem>>) attributes {dimension_semantics = [#tpu.dimension_semantics<parallel>, #tpu.dimension_semantics<parallel>], iteration_bounds = array<i64: 2, 2>, scalar_prefetch = 0 : i64, scratch_operands = 0 : i64, tpu.core_type = #tpu.core_type<tc>, window_params = [{transform_indices = @transform_0, window_bounds = array<i64: 1>}, {transform_indices = @transform_1, window_bounds = array<i64: 1, 16, 256>}, {pipeline_mode = #tpu.pipeline_mode<synchronous>, transform_indices = @transform_2, window_bounds = array<i64: 6, 16>}, {pipeline_mode = #tpu.pipeline_mode<synchronous>, transform_indices = @transform_3, window_bounds = array<i64: 2, 1>}, {pipeline_mode = #tpu.pipeline_mode<synchronous>, transform_indices = @transform_4, window_bounds = array<i64: 6, 16>}, {pipeline_mode = #tpu.pipeline_mode<synchronous>, transform_indices = @transform_5, window_bounds = array<i64: 2, 1>}, {pipeline_mode = #tpu.pipeline_mode<synchronous>, transform_indices = @transform_6, window_bounds = array<i64: 16, 16>}, {pipeline_mode = #tpu.pipeline_mode<synchronous>, transform_indices = @transform_7, window_bounds = array<i64: 16, 1>}, {transform_indices = @transform_8, window_bounds = array<i64: 1, 16, 128>}]} {
    %c128_i32 = arith.constant 128 : i32
    %0 = arith.muli %arg1, %c128_i32 : i32
    %1 = tpu.assume_multiple %0, 128 : i32
    %c0 = arith.constant 0 : index
    %c0_0 = arith.constant 0 : index
    %c0_1 = arith.constant 0 : index
    %2 = vector.load %arg3[%c0, %c0_0, %c0_1] : memref<1x16x256xf32, #tpu.memory_space<vmem>>, vector<1x16x256xf32>
    %3 = vector.shape_cast %2 : vector<1x16x256xf32> to vector<16x256xf32>
    %c0_i32 = arith.constant 0 : i32
    %c0_i32_2 = arith.constant 0 : i32
    %c0_i32_3 = arith.constant 0 : i32
    %4 = tpu.memref_slice %arg3[%c0_i32, %c0_i32_2, %c0_i32_3] : memref<1x16x256xf32, #tpu.memory_space<vmem>> -> memref<1x16x256xf32, #tpu.memory_space<vmem>>
    %5 = tpu.memref_squeeze %4 : memref<1x16x256xf32, #tpu.memory_space<vmem>> -> memref<16x256xf32, #tpu.memory_space<vmem>>
    %c0_4 = arith.constant 0 : index
    %6 = arith.index_cast %1 : i32 to index
    %7 = vector.load %5[%c0_4, %6] : memref<16x256xf32, #tpu.memory_space<vmem>>, vector<16x128xf32>
    %c0_5 = arith.constant 0 : index
    %c0_6 = arith.constant 0 : index
    %8 = vector.load %arg4[%c0_5, %c0_6] : memref<6x16xf32, #tpu.memory_space<vmem>>, vector<6x16xf32>
    %cst = arith.constant dense<0.000000e+00> : vector<6x128xf32>
    %9 = tpu.matmul %8, %7, %cst {dimension_numbers = #tpu.dot_dimension_numbers<[1], [0], [0], [1], [0, 0, 1, 1], [], []>} : vector<6x16xf32>, vector<16x128xf32>, vector<6x128xf32> -> vector<6x128xf32>
    %10 = tpu.iota {dimensions = array<i32: 1>} : vector<1x128xi32>
    %c16_i32 = arith.constant 16 : i32
    %c0_i32_7 = arith.constant 0 : i32
    %11 = arith.cmpi eq, %c16_i32, %c0_i32_7 : i32
    %c1_i32 = arith.constant 1 : i32
    %12 = arith.select %11, %c1_i32, %c16_i32 : i32
    %13 = vector.broadcast %12 : i32 to vector<1x128xi32>
    %14 = arith.remsi %10, %13 : vector<1x128xi32>
    %c0_i32_8 = arith.constant 0 : i32
    %15 = vector.broadcast %c0_i32_8 : i32 to vector<1x128xi32>
    %16 = arith.cmpi ne, %14, %15 : vector<1x128xi32>
    %c0_i32_9 = arith.constant 0 : i32
    %17 = vector.broadcast %c0_i32_9 : i32 to vector<1x128xi32>
    %18 = arith.cmpi slt, %14, %17 : vector<1x128xi32>
    %c0_i32_10 = arith.constant 0 : i32
    %19 = arith.cmpi slt, %12, %c0_i32_10 : i32
    %20 = vector.broadcast %19 : i1 to vector<1x128xi1>
    %21 = vector.broadcast %20 : vector<1x128xi1> to vector<1x128xi1>
    %22 = arith.xori %18, %21 : vector<1x128xi1>
    %23 = arith.andi %22, %16 : vector<1x128xi1>
    %24 = vector.broadcast %12 : i32 to vector<1x128xi32>
    %25 = arith.addi %14, %24 : vector<1x128xi32>
    %26 = arith.select %23, %25, %14 : vector<1x128xi1>, vector<1x128xi32>
    %c0_i32_11 = arith.constant 0 : i32
    %27 = vector.broadcast %c0_i32_11 : i32 to vector<1x128xi32>
    %28 = arith.cmpi sgt, %26, %27 : vector<1x128xi32>
    %29 = arith.extui %28 : vector<1x128xi1> to vector<1x128xi32>
    %30 = arith.sitofp %29 : vector<1x128xi32> to vector<1x128xf32>
    %c15_i32 = arith.constant 15 : i32
    %31 = vector.broadcast %c15_i32 : i32 to vector<1x128xi32>
    %32 = arith.cmpi slt, %26, %31 : vector<1x128xi32>
    %33 = arith.extui %32 : vector<1x128xi1> to vector<1x128xi32>
    %34 = arith.sitofp %33 : vector<1x128xi32> to vector<1x128xf32>
    %35 = vector.extract_strided_slice %9 {offsets = [2, 0], sizes = [2, 128], strides = [1, 1]} : vector<6x128xf32> to vector<2x128xf32>
    %36 = vector.extract_strided_slice %9 {offsets = [0, 0], sizes = [2, 128], strides = [1, 1]} : vector<6x128xf32> to vector<2x128xf32>
    %cst_12 = arith.constant 0.000000e+00 : f32
    %37 = vector.broadcast %cst_12 : f32 to vector<2x1xf32>
    %38 = vector.extract_strided_slice %36 {offsets = [0, 0], sizes = [2, 127], strides = [1, 1]} : vector<2x128xf32> to vector<2x127xf32>
    %39 = tpu.concatenate %37, %38 in 1 : vector<2x1xf32>, vector<2x127xf32> -> vector<2x128xf32>
    %40 = vector.broadcast %30 : vector<1x128xf32> to vector<2x128xf32>
    %41 = arith.mulf %39, %40 : vector<2x128xf32>
    %42 = arith.addf %35, %41 : vector<2x128xf32>
    %43 = vector.extract_strided_slice %9 {offsets = [4, 0], sizes = [2, 128], strides = [1, 1]} : vector<6x128xf32> to vector<2x128xf32>
    %cst_13 = arith.constant 0.000000e+00 : f32
    %44 = vector.broadcast %cst_13 : f32 to vector<2x1xf32>
    %45 = vector.extract_strided_slice %43 {offsets = [0, 1], sizes = [2, 127], strides = [1, 1]} : vector<2x128xf32> to vector<2x127xf32>
    %46 = tpu.concatenate %45, %44 in 1 : vector<2x127xf32>, vector<2x1xf32> -> vector<2x128xf32>
    %47 = vector.broadcast %34 : vector<1x128xf32> to vector<2x128xf32>
    %48 = arith.mulf %46, %47 : vector<2x128xf32>
    %49 = arith.addf %42, %48 : vector<2x128xf32>
    %c0_14 = arith.constant 0 : index
    %c0_15 = arith.constant 0 : index
    %50 = vector.load %arg5[%c0_14, %c0_15] : memref<2x1xf32, #tpu.memory_space<vmem>>, vector<2x1xf32>
    %51 = vector.broadcast %50 : vector<2x1xf32> to vector<2x128xf32>
    %52 = arith.addf %49, %51 : vector<2x128xf32>
    %cst_16 = arith.constant 0.000000e+00 : f32
    %53 = vector.broadcast %cst_16 : f32 to vector<2x128xf32>
    %54 = arith.maximumf %52, %53 : vector<2x128xf32>
    %c0_17 = arith.constant 0 : index
    %c0_18 = arith.constant 0 : index
    %55 = vector.load %arg6[%c0_17, %c0_18] : memref<6x16xf32, #tpu.memory_space<vmem>>, vector<6x16xf32>
    %cst_19 = arith.constant dense<0.000000e+00> : vector<6x256xf32>
    %56 = tpu.matmul %55, %3, %cst_19 {dimension_numbers = #tpu.dot_dimension_numbers<[1], [0], [0], [1], [0, 0, 1, 1], [], []>} : vector<6x16xf32>, vector<16x256xf32>, vector<6x256xf32> -> vector<6x256xf32>
    %57 = vector.extract_strided_slice %56 {offsets = [2, 0], sizes = [2, 256], strides = [1, 1]} : vector<6x256xf32> to vector<2x256xf32>
    %58 = vector.extract_strided_slice %56 {offsets = [0, 0], sizes = [2, 256], strides = [1, 1]} : vector<6x256xf32> to vector<2x256xf32>
    %cst_20 = arith.constant 0.000000e+00 : f32
    %59 = vector.broadcast %cst_20 : f32 to vector<2x16xf32>
    %60 = vector.extract_strided_slice %58 {offsets = [0, 0], sizes = [2, 240], strides = [1, 1]} : vector<2x256xf32> to vector<2x240xf32>
    %61 = tpu.concatenate %59, %60 in 1 : vector<2x16xf32>, vector<2x240xf32> -> vector<2x256xf32>
    %62 = arith.addf %57, %61 : vector<2x256xf32>
    %63 = vector.extract_strided_slice %56 {offsets = [4, 0], sizes = [2, 256], strides = [1, 1]} : vector<6x256xf32> to vector<2x256xf32>
    %cst_21 = arith.constant 0.000000e+00 : f32
    %64 = vector.broadcast %cst_21 : f32 to vector<2x16xf32>
    %65 = vector.extract_strided_slice %63 {offsets = [0, 16], sizes = [2, 240], strides = [1, 1]} : vector<2x256xf32> to vector<2x240xf32>
    %66 = tpu.concatenate %65, %64 in 1 : vector<2x240xf32>, vector<2x16xf32> -> vector<2x256xf32>
    %67 = arith.addf %62, %66 : vector<2x256xf32>
    %c0_22 = arith.constant 0 : index
    %c0_23 = arith.constant 0 : index
    %68 = vector.load %arg7[%c0_22, %c0_23] : memref<2x1xf32, #tpu.memory_space<vmem>>, vector<2x1xf32>
    %69 = vector.broadcast %68 : vector<2x1xf32> to vector<2x256xf32>
    %70 = arith.addf %67, %69 : vector<2x256xf32>
    %cst_24 = arith.constant 0.000000e+00 : f32
    %71 = vector.broadcast %cst_24 : f32 to vector<2x256xf32>
    %72 = arith.maximumf %70, %71 : vector<2x256xf32>
    %c0_25 = arith.constant 0 : index
    %c0_26 = arith.constant 0 : index
    %73 = vector.load %arg8[%c0_25, %c0_26] : memref<16x16xf32, #tpu.memory_space<vmem>>, vector<16x16xf32>
    %cst_27 = arith.constant dense<0.000000e+00> : vector<16x256xf32>
    %74 = tpu.matmul %73, %3, %cst_27 {dimension_numbers = #tpu.dot_dimension_numbers<[1], [0], [0], [1], [0, 0, 1, 1], [], []>} : vector<16x16xf32>, vector<16x256xf32>, vector<16x256xf32> -> vector<16x256xf32>
    %c0_28 = arith.constant 0 : index
    %c0_29 = arith.constant 0 : index
    %75 = vector.load %arg9[%c0_28, %c0_29] : memref<16x1xf32, #tpu.memory_space<vmem>>, vector<16x1xf32>
    %76 = vector.broadcast %75 : vector<16x1xf32> to vector<16x256xf32>
    %77 = arith.addf %74, %76 : vector<16x256xf32>
    %cst_30 = arith.constant dense<0.000000e+00> : vector<256x128xf32>
    %78 = tpu.matmul %72, %54, %cst_30 {dimension_numbers = #tpu.dot_dimension_numbers<[0], [0], [1], [1], [0, 1, 1, 1], [], []>} : vector<2x256xf32>, vector<2x128xf32>, vector<256x128xf32> -> vector<256x128xf32>
    %cst_31 = arith.constant dense<0xFF800000> : vector<128xf32>
    %79 = vector.multi_reduction <maximumf>, %78, %cst_31 [0] : vector<256x128xf32> to vector<128xf32>
    %80 = vector.shape_cast %79 : vector<128xf32> to vector<1x128xf32>
    %81 = vector.broadcast %80 : vector<1x128xf32> to vector<256x128xf32>
    %82 = arith.subf %78, %81 : vector<256x128xf32>
    %83 = math.exp %82 : vector<256x128xf32>
    %cst_32 = arith.constant dense<0.000000e+00> : vector<128xf32>
    %84 = vector.multi_reduction <add>, %83, %cst_32 [0] : vector<256x128xf32> to vector<128xf32>
    %85 = vector.shape_cast %84 : vector<128xf32> to vector<1x128xf32>
    %86 = arith.truncf %77 : vector<16x256xf32> to vector<16x256xbf16>
    %87 = arith.truncf %83 : vector<256x128xf32> to vector<256x128xbf16>
    %cst_33 = arith.constant dense<0.000000e+00> : vector<16x128xf32>
    %88 = tpu.matmul %86, %87, %cst_33 {dimension_numbers = #tpu.dot_dimension_numbers<[1], [0], [0], [1], [0, 0, 1, 1], [], []>} : vector<16x256xbf16>, vector<256x128xbf16>, vector<16x128xf32> -> vector<16x128xf32>
    %89 = tpu.reciprocal %85 {approx = true} : vector<1x128xf32> -> vector<1x128xf32>
    %c0_34 = arith.constant 0 : index
    %90 = memref.load %arg2[%c0_34] : memref<1xf32, #tpu.memory_space<smem>>
    %91 = vector.broadcast %89 : vector<1x128xf32> to vector<16x128xf32>
    %92 = arith.mulf %88, %91 : vector<16x128xf32>
    %93 = vector.broadcast %90 : f32 to vector<16x128xf32>
    %94 = arith.mulf %93, %92 : vector<16x128xf32>
    %95 = arith.addf %94, %7 : vector<16x128xf32>
    %c0_35 = arith.constant 0 : index
    %c0_36 = arith.constant 0 : index
    %c0_37 = arith.constant 0 : index
    %96 = vector.load %arg10[%c0_35, %c0_36, %c0_37] : memref<1x16x128xf32, #tpu.memory_space<vmem>>, vector<1x16x128xf32>
    %97 = vector.shape_cast %96 : vector<1x16x128xf32> to vector<16x128xf32>
    %98 = vector.shape_cast %95 : vector<16x128xf32> to vector<1x16x128xf32>
    tpu.vector_store %arg10[%c0_35, %c0_36, %c0_37], %98 {strides = array<i32>} : memref<1x16x128xf32, #tpu.memory_space<vmem>>, vector<1x16x128xf32>,
    return
  }
  func.func @transform_0(%arg0: i32, %arg1: i32) -> i32 {
    %c0_i32 = arith.constant 0 : i32
    %c0_i32_0 = arith.constant 0 : i32
    return %c0_i32 : i32
  }
  func.func @transform_1(%arg0: i32, %arg1: i32) -> (i32, i32, i32) {
    %c0_i32 = arith.constant 0 : i32
    %c0_i32_0 = arith.constant 0 : i32
    %c0_i32_1 = arith.constant 0 : i32
    return %arg0, %c0_i32, %c0_i32_0 : i32, i32, i32
  }
  func.func @transform_2(%arg0: i32, %arg1: i32) -> (i32, i32) {
    %c0_i32 = arith.constant 0 : i32
    %c0_i32_0 = arith.constant 0 : i32
    %c0_i32_1 = arith.constant 0 : i32
    return %c0_i32, %c0_i32_0 : i32, i32
  }
  func.func @transform_3(%arg0: i32, %arg1: i32) -> (i32, i32) {
    %c0_i32 = arith.constant 0 : i32
    %c0_i32_0 = arith.constant 0 : i32
    %c0_i32_1 = arith.constant 0 : i32
    return %c0_i32, %c0_i32_0 : i32, i32
  }
  func.func @transform_4(%arg0: i32, %arg1: i32) -> (i32, i32) {
    %c0_i32 = arith.constant 0 : i32
    %c0_i32_0 = arith.constant 0 : i32
    %c0_i32_1 = arith.constant 0 : i32
    return %c0_i32, %c0_i32_0 : i32, i32
  }
  func.func @transform_5(%arg0: i32, %arg1: i32) -> (i32, i32) {
    %c0_i32 = arith.constant 0 : i32
    %c0_i32_0 = arith.constant 0 : i32
    %c0_i32_1 = arith.constant 0 : i32
    return %c0_i32, %c0_i32_0 : i32, i32
  }
  func.func @transform_6(%arg0: i32, %arg1: i32) -> (i32, i32) {
    %c0_i32 = arith.constant 0 : i32
    %c0_i32_0 = arith.constant 0 : i32
    %c0_i32_1 = arith.constant 0 : i32
    return %c0_i32, %c0_i32_0 : i32, i32
  }
  func.func @transform_7(%arg0: i32, %arg1: i32) -> (i32, i32) {
    %c0_i32 = arith.constant 0 : i32
    %c0_i32_0 = arith.constant 0 : i32
    %c0_i32_1 = arith.constant 0 : i32
    return %c0_i32, %c0_i32_0 : i32, i32
  }
  func.func @transform_8(%arg0: i32, %arg1: i32) -> (i32, i32, i32) {
    %c0_i32 = arith.constant 0 : i32
    %c0_i32_0 = arith.constant 0 : i32
    return %arg0, %c0_i32, %arg1 : i32, i32, i32
  }
}

</mosaic_0001>

<bundles_post_ra>
// kernel: tpu_custom_call.1
= control target key start
LH: loop header
LB: loop body
LE: loop exit
PB: predicated region body
PF: predicated region fallthrough
CT: control target
= control target key end

     0   :  { %s2620_s0 = inlined_call_operand.<no memory space> [shape: f32[1], index: 0, kind: input, shape index: {}]   ;;  %s2621_s1 = inlined_call_operand.hbm [shape: f32[2,16,256], index: 1, kind: input, shape index: {}]   ;;  %s2622_s2 = inlined_call_operand.vmem [shape: f32[6,16], index: 2, kind: input, shape index: {}]   ;;  %s2623_s3 = inlined_call_operand.vmem [shape: f32[2,1], index: 3, kind: input, shape index: {}]   ;;  %s2624_s4 = inlined_call_operand.vmem [shape: f32[6,16], index: 4, kind: input, shape index: {}]   ;;  %s2625_s5 = inlined_call_operand.vmem [shape: f32[2,1], index: 5, kind: input, shape index: {}]   ;;  %s2626_s6 = inlined_call_operand.vmem [shape: f32[16,16], index: 6, kind: input, shape index: {}]   ;;  %s2627_s7 = inlined_call_operand.vmem [shape: f32[16,1], index: 7, kind: input, shape index: {}]   ;;  %s2628_s8 = inlined_call_operand.hbm [shape: f32[2,16,256], index: 8, kind: output, shape index: {}]  }
   0x1   :  { %2635 = sst [smem:[#allocation13_spill]] %s2628_s8 }
   0x2   :  { %13 = sst [smem:[#allocation2]] %s2620_s0 }
   0x3   :  { %14 = vsyncpa [#allocation4], 0 }
   0x4   :  { %16 = vsyncpa [#allocation4 + $0x1], 0 }
   0x5   :  { %17 = vsyncpa [#allocation5], 0 }
   0x6   :  { %19 = vsyncpa [#allocation5 + $0x1], 0  ;;  %s2013_s29 = smov 0   ;;  %s2015_s30 = smov 0  }
   0x7   :  { %s2017_s9 = smov 0   ;;  %s2019_s10 = smov 0  }
   0x8   :  { %s2021_s11 = smov 0   ;;  %s2023_s12 = smov 0  }
   0x9   :  { %s2025_s13 = smov 0   ;;  %s2027_s14 = smov 0  }
   0xa   :  { %s2029_s0 = smov 0   ;;  %s2031_s15 = smov 0  }
   0xb   :  { %s2033_s16 = smov 0  }
   0xc LB: > { %2636 = sst [smem:[#allocation9_spill]] %s1940_s0  ;;  %s1430_s17 = sadd.s32 4294967295, %s1948_s16   ;;  %s1948_s16 = sphi %s2033_s16, %s25_s16   ;;  %s1944_s15 = sphi %s2031_s15, %s2654_s15   ;;  %s1940_s0 = sphi %s2029_s0, %s2653_s0   ;;  %s1936_s14 = sphi %s2027_s14, %s2652_s14   ;;  %s1932_s13 = sphi %s2025_s13, %s2651_s13   ;;  %s1928_s12 = sphi %s2023_s12, %s2660_s12   ;;  %s1924_s11 = sphi %s2021_s11, %s2659_s11   ;;  %s1920_s10 = sphi %s2019_s10, %s2658_s10   ;;  %s1916_s9 = sphi %s2017_s9, %s2657_s9   ;;  %s1912_s30 = sphi %s2015_s30, %s2656_s30   ;;  %s1908_s29 = sphi %s2013_s29, %s2655_s29  }
   0xd   : > { %2637 = sst [smem:[#allocation10_spill]] %s1944_s15  ;;  %s1431_s18 = sadd.s32 4294967294, %s1948_s16  }
   0xe   : > { %s34_s19 = sadd.s32 1, %s1940_s0  ;;  %s37_s20 = sadd.s32 1, %s1944_s15 }
   0xf   : > { %p35_p0 = scmp.ge.s32.totalorder %s34_s19, 2  ;;  %s65_s21 = sadd.s32 1, %s1928_s12 }
  0x10   : > { %p72_p1 = scmp.ne.s32.totalorder %s1928_s12, %s1924_s11  ;;  %p73_p2 = scmp.eq.s32.totalorder %s1948_s16, 0 }
  0x11   : > { %s2662_s19 = smov (%p35_p0, %s34_s19), 0  ;;  %s2664_s20 = smov (!%p35_p0, %s37_s20), %s1944_s15 }
  0x12   : > { %2638 = sst [smem:[#allocation11_spill]] %s2662_s19  ;;  %p2077_p3 = por %p73_p2, %p72_p1 }
  0x13   : > { %p78_p4 = scmp.ne.s32.totalorder %s1924_s11, %s1920_s10  ;;  %p39_p5 = scmp.ge.s32.totalorder %s2664_s20, 2 }
  0x14   : > { %p79_p6 = scmp.eq.s32.totalorder %s1430_s17, 0  ;;  %s215_s23 = ssub.s32 %s1940_s0, %s2662_s19 }
  0x15   : > { %s219_s24 = sadd.s32 1, %s1916_s9  ;;  %s2666_s20 = smov (%p39_p5, %s2664_s20), 0 }
  0x16   : > { %2640 = sst [smem:[#allocation12_spill]] %s2666_s20  ;;  %p2087_p7 = por %p79_p6, %p78_p4 }
  0x17   : > { %p229_p8 = scmp.ne.s32.totalorder %s1916_s9, %s1912_s30  ;;  %s62_s26 = ssub.s32 %s1944_s15, %s2666_s20 }
  0x18   : > { %p230_p9 = scmp.eq.s32.totalorder %s1430_s17, 3  ;;  %p63_p10 = scmp.eq.s32.totalorder %s62_s26, 0 }
  0x19   : > { %s216_s27 = sor.u32 %s215_s23, %s62_s26  ;;  %p235_p13 = scmp.ne.s32.totalorder %s1912_s30, %s1908_s29 }
  0x1a   : > { %p217_p11 = scmp.eq.s32.totalorder %s216_s27, 0  ;;  %p2095_p12 = por %p230_p9, %p229_p8 }
  0x1b   : > { %s2100_s10 = scalar_select %p63_p10, %s1928_s12, %s65_s21  }
  0x1c   : > { %s2642_s28 = scalar_select %p2095_p12, 1, 0 }
  0x1d   : > { %s2103_s19 = scalar_select %p217_p11, %s1916_s9, %s219_s24  }
  0x1e   : > { %p236_p0 = scmp.eq.s32.totalorder %s1431_s18, 3  ;;  %p1625_p1 = scmp.lt.s32.totalorder %s1948_s16, 4 }
  0x1f   : > { %s277_s17 = sand.u32 1, %s1928_s12   ;;  %s1486_s26 = sshll.u32 %s1944_s15, 9 }
  0x20   : > { %p2108_p2 = por %p236_p0, %p235_p13  ;;  %s1434_s23 = sshll.u32 %s277_s17, 5 }
  0x21   : > { %s2117_s8 = scalar_lea.hbm %s2621_s1, %s1486_s26  ;;  %s281_s21 = scalar_lea.vmem [#allocation3], %s1434_s23 }
  0x22   : > { %s2643_s0 = scalar_select %p2108_p2, 1, 0 }
  0x23   : > { %s288_s24 = sshll.u32 %s281_s21, 4  ;;  %p2123_p4 = pnand %p1625_p1, %p2077_p3  ;;  %s2119_s24 = int_to_ptr.vmem [resolvable:$true] %s288_s24 }
  0x24   : > { %s2128_s15 = scalar_lea.sflag [#allocation4], %s277_s17  ;;  %s1796_s20 = scalar_lea.hbm %s2117_s8, 512 }
  0x25   : > { %p1797_p6 = scmp.ne.s32.totalorder %s2117_s8, %s1796_s20  ;;  %p1798_p8 = pneg %p2123_p4 }
  0x26   : > { %s1801_s22 = scalar_lea.hbm %s2621_s1, 1024  ;;  %p1802_p3 = scmp.lt.u32.totalorder %s2117_s8, %s2621_s1 }
  0x27   : > { %p1799_p9 = pnand %p1798_p8, %p1797_p6  ;;  %p1803_p11 = scmp.lt.u32.totalorder %s1801_s22, %s1796_s20 }
  0x28   : > { %p1805_p0 = scmp.lt.u32.totalorder %s1796_s20, %s2117_s8 }
  0x29   : > { %p1800_p10 = pneg %p1799_p9  ;;  %p1804_p13 = por %p1803_p11, %p1802_p3 }
  0x2b   : > { %p1806_p1 = por %p1805_p0, %p1804_p13 }
  0x2d   : > { %p1807_p5 = pnand %p1806_p1, %p1800_p10 }
  0x2f   : > { %1810 = shalt.err (!%p1807_p5)
}
  0x30   : > { %s1811_s17 = scalar_lea.vmem %s2119_s24, 512  ;;  %s1950_s23 = smov [#allocation3]  }
  0x31   : > { %p1812_p6 = scmp.ne.s32.totalorder %s2119_s24, %s1811_s17  ;;  %s1816_s26 = sshll.u32 %s1950_s23, 4  ;;  %s1817_s26 = int_to_ptr.vmem [resolvable:$false] %s1816_s26 }
  0x32   : > { %s1818_s27 = scalar_lea.vmem %s1817_s26, 1024  ;;  %p1819_p12 = scmp.lt.s32.totalorder %s2119_s24, %s1817_s26 }
  0x33   : > { %p1814_p9 = pnand %p1812_p6, %p1798_p8  ;;  %p1820_p3 = scmp.lt.s32.totalorder %s1818_s27, %s1811_s17 }
  0x35   : > { %p1815_p2 = pneg %p1814_p9  ;;  %p1821_p11 = por %p1820_p3, %p1819_p12 }
  0x37   : > { %p1822_p13 = pnand %p1821_p11, %p1815_p2 }
  0x39   : > { %1825 = shalt.err (!%p1822_p13)
}
  0x3a   : > { %s1951_s20 = smov 256   ;;  %s1952_s22 = smov 16  }
  0x3b   : > { %1620 = dma.hbm_to_vmem [thread:$0]  (!%p2123_p4), %s2117_s8, 512, %s2119_s24, %s2128_s15, %s1951_s20, %s1951_s20, %s1952_s22  }
  0x3c   : > { %p296_p5 = scmp.lt.s32.totalorder %s1948_s16, 5  ;;  %p2645_p8 = scmp.ge.s32.totalorder %s1948_s16, 1 }
  0x3e   : > { %p297_p10 = pnand %p2645_p8, %p296_p5 }
  0x3f   : > { %s302_s21 = sand.u32 (!%p297_p10), 1, %s1924_s11  }
  0x40   : > { %300 = sbr.rel (%p297_p10) target bundleno = 1191 (0x4a7), region = 52  ;;  %s1438_s17 = sshll.u32 (!%p297_p10), %s302_s21, 5 }
  0x41   : > { %s303_s23 = scalar_lea.sflag (!%p297_p10), [#allocation4], %s302_s21  ;;  %s306_s26 = scalar_lea.vmem (!%p297_p10), [#allocation3], %s1438_s17 }
  0x47   : > { %1899 = dma.done.wait (%p2087_p7), %s303_s23, 512  }
  0x48   : > { %1901 = vsyncadd (%p2087_p7), %s303_s23, 4294966784  ;;  %s1440_s27 = sshll.u32 %s1932_s13, 7  ;;  %v1953_v0 = vmov 0.0|0.0   ;;  %vm1954_vm0 = vmmov 0   ;;  %v1955_v1 = vmov 0.0   ;;  %v1956_v2 = vmov 0  }
  0x49   : > { %1602 = vmatprep.subr.bf16.mxu0 %v1953_v0  ;;  %s345_s8 = sshra.s32 %s1440_s27, 7  ;;  %1549 = vmatprep.mubr.msk.f32.mxu0 %vm1954_vm0, %v1955_v1  ;;  %v342_v6 = vld [vmem:[%s306_s26 + $0x8] sm:$0xff]  ;;  %v344_v7 = vld [vmem:[%s306_s26 + $0x18] sm:$0xff]  ;;  %v341_v8 = vld [vmem:[%s306_s26] sm:$0xff]  ;;  %vm352_vm1 = vcmask 130048   ;;  %s1957_s23 = smov 112   ;;  %v426_v22 = vlaneseq }
  0x4a   : > { %s1441_s15 = sshll.u32 %s345_s8, 3  ;;  %1728 = vset.pattern.permute.xlu0 %v1956_v2  ;;  %v1605_v9 = vpack.c.bf16 %v344_v7, %v342_v6  ;;  %v343_v10 = vld [vmem:[%s306_s26 + $0x10] sm:$0xff]  ;;  %v582_v11 = vld [vmem:[%s2625_s5] sm:$0x3]  ;;  %s1960_s18 = smov 127   ;;  %v594_v21 = vld [vmem:[%s2626_s6 + $0x8] sm:$0xff] }
  0x4b   : > { %s348_s24 = scalar_lea.vmem %s306_s26, %s1441_s15 [#allocation3]  ;;  %v351_v12 = vld [vmem:[%s2622_s2] sm:$0x3f]  ;;  %v1607_v13 = vpack.c.bf16 %v343_v10, %v341_v8  ;;  %585 = vperm.xlu0 %1728, %v582_v11   ;;  %s1958_s26 = smov 16   ;;  %v427_v24 = vand.u32 127, %v426_v22  ;;  %vm571_vm2 = vcmask 916480   ;;  %vm450_vm4 = vcmask 7168  }
  0x4c   : > { %v2167_v3 = vld [vmem:[%s348_s24] sm:$0xff]  ;;  %v2169_v4 = vld [vmem:[%s348_s24 + $0x10] sm:$0xff]  ;;  %s1959_s15 = smov 1   ;;  %vm460_vm6 = vcmask 1039360   ;;  %vm859_vm7 = vcmask 1041408   ;;  %vm762_vm8 = vcmask 15360  }
  0x4d   : > { %v1603_v5 = vpack.c.bf16 %v2169_v4, %v2167_v3  ;;  %v476_v14 = vld [vmem:[%s2624_s4] sm:$0x3f]  ;;  %v432_v28 = vand.u32 15, %v427_v24  ;;  %s1317_s27 = sld [smem:[#allocation2]]  ;;  %s336_s8 = sand.u32 1, %s1912_s30  }
  0x4e   : > { %v467_v19 = vld [vmem:[%s2623_s3] sm:$0x3]  ;;  %s1482_s24 = sshll.u32 %s1936_s14, 2  ;;  %p2648_p12 = scmp.ne.s32.totalorder %s2642_s28, 0 }
  0x4f   : > { %1604 = vmatpush3.bf16.msra.mxu0 %v1603_v5  ;;  %v593_v20 = vld [vmem:[%s2626_s6] sm:$0xff]  ;;  %vm440_vm3 = vcmp.gt.s32.totalorder %v432_v28, 0  ;;  %vm443_vm5 = vcmp.lt.s32.totalorder %v432_v28, 15  ;;  %v596_v5 = vld [vmem:[%s2627_s7 + $0x8] sm:$0xff]  ;;  %s1339_s25 = sadd.s32 %s1932_s13, %s1482_s24  ;;  %s2646_s13 = sld [smem:[#allocation13_spill]] }
  0x50   : > { %1606 = vmatprep.subr.bf16.mxu0 %v1605_v9  ;;  %v1443_v43 = vsel %vm440_vm3, 1.0, %v1955_v1  ;;  %v1444_v47 = vsel %vm443_vm5, 1.0, %v1955_v1  ;;  %v595_v8 = vld [vmem:[%s2627_s7] sm:$0xff]  ;;  %s1483_s22 = sshll.u32 %s1339_s25, 7 }
  0x52   : > { %1550 = vmatmul.mubr.msk.f32.vlgmr.msra.gmra.mrb[0].mxu0 %vm352_vm1, %v351_v12 }
  0x53   : > { %1608 = vmatpush1.bf16.msra.mxu0 %v1607_v13  ;;  %544 = vmatprep.mubr.f32.mxu0 %v1955_v1 }
  0x54   : > { %1610 = vmatprep.subr.bf16.mxu0 %v1605_v9 }
  0x55   : > { %s2647_s17 = smov %s2646_s13 }
  0x56   : > { %1445 = vmatmul.mubr.msk.f32.vlgmr.msra.gmra.mrb[2].mxu0 %vm352_vm1, %v476_v14 }
  0x57   : > { %1612 = vmatpush1.bf16.msra.mxu0 %v1607_v13  ;;  %677 = vmatprep.mubr.f32.mxu0 %v1955_v1 }
  0x5a   : > { %1446 = vmatmul.mubr.msk.f32.vlgmr.msra.gmra.mrb[4].mxu0 %vm352_vm1, %v593_v20 }
  0x5b   : > { %683 = vmatprep.mubr.f32.mxu0 %v1955_v1 }
  0x5e   : > { %1447 = vmatmul.mubr.msk.f32.gmra.mrb[6].mxu0 %vm352_vm1, %v594_v21 }
  0xca   : > { %v586_v23 = vpop.permute.xlu0 %585 }
  0xcb   : > { %v587_v38 = vrot.slane %v586_v23, 6 }
 0x125   : > { %v2186_v15 = vpop.f32.mrb[0].mxu0 }
 0x126   : > { %v1551_v16 = vpop.f32.mrb[1].mxu0 }
 0x129   : > { %v546_v17 = vpop.f32.mrb[2].mxu0 }
 0x12a   : > { %567 = vrot.lane.b32.xlu1 %v546_v17, %s1957_s23  ;;  %553 = vrot.lane.b32.xlu0 %v546_v17, %s1958_s26  ;;  %v548_v18 = vpop.f32.mrb[3].mxu0 }
 0x12d   : > { %v2211_v6 = vpop.f32.mrb[4].mxu0 }
 0x12e   : > { %555 = vrot.lane.b32.xlu0 %v548_v18, %s1958_s26  ;;  %569 = vrot.lane.b32.xlu1 %v548_v18, %s1957_s23  ;;  %v2213_v7 = vpop.f32.mrb[5].mxu0  ;;  %s2557_s23 = scalar_lea.hbm %s2646_s13, %s1483_s22  ;;  %s2559_s26 = scalar_lea.sflag [#allocation5], %s336_s8 }
 0x131   : > { %v2218_v9 = vpop.f32.mrb[6].mxu0 }
 0x132   : > { %470 = vperm.xlu0 %1728, %v467_v19   ;;  %447 = vrot.lane.b32.xlu1 %v2186_v15, %s1959_s15  ;;  %v2220_v10 = vpop.f32.mrb[7].mxu0  ;;  %s1439_s15 = sshll.u32 %s336_s8, 4 }
 0x136   : > { %457 = vrot.lane.b32.xlu1 %v2186_v15, %s1960_s18  ;;  %s338_s18 = scalar_lea.vmem [#allocation6], %s1439_s15  ;;  %s1961_s15 = smov [#allocation6]  }
 0x137   : > { %s1342_s20 = sshll.u32 %s338_s18, 4  ;;  %s1830_s24 = sshll.u32 %s1961_s15, 4  ;;  %s2551_s20 = int_to_ptr.vmem [resolvable:$true] %s1342_s20  ;;  %s1831_s24 = int_to_ptr.vmem [resolvable:$false] %s1830_s24 }
 0x138   : > { %s1832_s25 = scalar_lea.vmem %s1831_s24, 512  ;;  %p1833_p0 = scmp.lt.s32.totalorder %s2551_s20, %s1831_s24 }
 0x19c   : > { %v568_v25 = vpop.permute.xlu1 %567  ;;  %v554_v26 = vpop.permute.xlu0 %553 }
 0x19d   : > { %v559_v27 = vsel %vm352_vm1, 0.0, %v554_v26 }
 0x19e   : > { %v561_v29 = vrot.slane %v559_v27, 6 }
 0x1a0   : > { %v556_v30 = vpop.permute.xlu0 %555  ;;  %v570_v31 = vpop.permute.xlu1 %569  ;;  %v565_v35 = vadd.f32 %v561_v29, %v546_v17 }
 0x1a1   : > { %v557_v32 = vsel %vm352_vm1, %v554_v26, %v556_v30  ;;  %v572_v33 = vsel %vm571_vm2, %v568_v25, %v570_v31  ;;  %v574_v34 = vsel %vm571_vm2, %v570_v31, 0.0 }
 0x1a2   : > { %v562_v36 = vrot.slane %v557_v32, 6  ;;  %v576_v37 = vrot.slane %v572_v33, 2  ;;  %v577_v40 = vrot.slane %v574_v34, 2 }
 0x1a4   : > { %v566_v39 = vadd.f32 %v562_v36, %v548_v18  ;;  %v580_v41 = vadd.f32 %v576_v37, %v565_v35  ;;  %v448_v42 = vpop.permute.xlu1 %447 }
 0x1a5   : > { %v451_v44 = vsel %vm450_vm4, 0.0, %v448_v42 }
 0x1a6   : > { %v581_v45 = vadd.f32 %v577_v40, %v566_v39  ;;  %v589_v46 = vadd.f32 %v587_v38, %v580_v41  ;;  %v452_v48 = vmul.f32 %v1443_v43, %v451_v44 }
 0x1a8   : > { %v458_v49 = vpop.permute.xlu1 %457  ;;  %v591_v50 = vmax.f32 %v589_v46, 0.0  ;;  %v590_v51 = vadd.f32 %v587_v38, %v581_v45  ;;  %v454_v56 = vrot.slane %v452_v48, 6 }
 0x1a9   : > { %v461_v52 = vsel %vm460_vm6, %v458_v49, 0.0 }
 0x1aa   : > { %v462_v53 = vmul.f32 %v1444_v47, %v461_v52  ;;  %v692_v54 = vrot.slane %v591_v50, 2  ;;  %v592_v55 = vmax.f32 %v590_v51, 0.0  ;;  %v456_v59 = vadd.f32 %v454_v56, %v2186_v15 }
 0x1ac   : > { %696 = vxpose.xlu0.b32.start.end [1/1] (short) %v692_v54, 128  ;;  %v693_v57 = vrot.slane %v592_v55, 2  ;;  %v464_v58 = vrot.slane %v462_v53, 2 }
 0x1ae   : > { %728 = vxpose.xlu1.b32.start.end [1/1] (short) %v693_v57, 128  ;;  %v466_v61 = vadd.f32 %v464_v58, %v456_v59 }
 0x1b1   : > { %v471_v60 = vpop.permute.xlu0 %470 }
 0x1b2   : > { %v472_v62 = vrot.slane %v471_v60, 6 }
 0x1b4   : > { %v474_v63 = vadd.f32 %v472_v62, %v466_v61 }
 0x1b6   : > { %v475_v0 = vmax.f32 %v474_v63, 0.0 }
 0x1b8   : > { %v761_v1 = vrot.slane %v475_v0, 2 }
 0x1ba   : > { %1552 = vmatprep.subr.msk.mxu1 %vm859_vm7, %v761_v1 }
 0x1bb   : > { %1553 = vmatpush3.msk.msra.mxu1 %vm859_vm7, %v761_v1 }
 0x1cc   : > { %1729 = vset.pattern.permute.xlu1 %v1956_v2 }
 0x208   : > { %604 = vperm.xlu1 %1729, %v596_v5  }
 0x211   : > { %599 = vperm.xlu0 %1728, %v595_v8  }
 0x22c   : > { %v712_v2 = vpop.trf.xlu0 }
 0x22d   : > { %1554 = vmatprep.mubr.msk.f32.mxu1 %vm762_vm8, %v712_v2 }
 0x22e   : > { %v744_v11 = vpop.trf.xlu1 }
 0x230   : > { %v713_v12 = vpop.trf.xlu0 }
 0x231   : > { %1555 = vmatmul.mubr.msk.f32.vlgmr.msra.gmra.mrb[0].mxu1 %vm762_vm8, %v713_v12 }
 0x232   : > { %v745_v13 = vpop.trf.xlu1 }
 0x234   : > { %v714_v14 = vpop.trf.xlu0 }
 0x235   : > { %1557 = vmatprep.mubr.msk.f32.mxu1 %vm762_vm8, %v714_v14 }
 0x236   : > { %v746_v15 = vpop.trf.xlu1 }
 0x238   : > { %v715_v16 = vpop.trf.xlu0 }
 0x239   : > { %1558 = vmatmul.mubr.msk.f32.gmra.mrb[2].mxu1 %vm762_vm8, %v715_v16 }
 0x23a   : > { %v747_v17 = vpop.trf.xlu1 }
 0x23c   : > { %v716_v18 = vpop.trf.xlu0 }
 0x23d   : > { %1560 = vmatprep.mubr.msk.f32.mxu1 %vm762_vm8, %v716_v18 }
 0x23e   : > { %v748_v20 = vpop.trf.xlu1 }
 0x240   : > { %v717_v19 = vpop.trf.xlu0 }
 0x241   : > { %1561 = vmatmul.mubr.msk.f32.gmra.mrb[4].mxu1 %vm762_vm8, %v717_v19 }
 0x242   : > { %v749_v22 = vpop.trf.xlu1 }
 0x244   : > { %v718_v21 = vpop.trf.xlu0 }
 0x245   : > { %1563 = vmatprep.mubr.msk.f32.mxu1 %vm762_vm8, %v718_v21 }
 0x246   : > { %v750_v25 = vpop.trf.xlu1 }
 0x248   : > { %v719_v23 = vpop.trf.xlu0 }
 0x249   : > { %1564 = vmatmul.mubr.msk.f32.gmra.mrb[6].mxu1 %vm762_vm8, %v719_v23 }
 0x24a   : > { %v751_v27 = vpop.trf.xlu1 }
 0x24c   : > { %v720_v24 = vpop.trf.xlu0 }
 0x24d   : > { %1566 = vmatprep.mubr.msk.f32.mxu1 %vm762_vm8, %v720_v24 }
 0x24e   : > { %v752_v30 = vpop.trf.xlu1 }
 0x250   : > { %v721_v26 = vpop.trf.xlu0 }
 0x251   : > { %1567 = vmatmul.mubr.msk.f32.gmra.mrb[8].mxu1 %vm762_vm8, %v721_v26 }
 0x252   : > { %v753_v32 = vpop.trf.xlu1 }
 0x254   : > { %v722_v28 = vpop.trf.xlu0 }
 0x255   : > { %1569 = vmatprep.mubr.msk.f32.mxu1 %vm762_vm8, %v722_v28 }
 0x256   : > { %v754_v35 = vpop.trf.xlu1 }
 0x258   : > { %v723_v29 = vpop.trf.xlu0 }
 0x259   : > { %1570 = vmatmul.mubr.msk.f32.gmra.mrb[10].mxu1 %vm762_vm8, %v723_v29 }
 0x25a   : > { %v755_v37 = vpop.trf.xlu1 }
 0x25c   : > { %v724_v31 = vpop.trf.xlu0 }
 0x25d   : > { %1572 = vmatprep.mubr.msk.f32.mxu1 %vm762_vm8, %v724_v31 }
 0x25e   : > { %v756_v38 = vpop.trf.xlu1 }
 0x260   : > { %v725_v33 = vpop.trf.xlu0 }
 0x261   : > { %1573 = vmatmul.mubr.msk.f32.gmra.mrb[12].mxu1 %vm762_vm8, %v725_v33 }
 0x262   : > { %v757_v39 = vpop.trf.xlu1 }
 0x264   : > { %v726_v34 = vpop.trf.xlu0 }
 0x265   : > { %1575 = vmatprep.mubr.msk.f32.mxu1 %vm762_vm8, %v726_v34 }
 0x266   : > { %v758_v40 = vpop.trf.xlu1 }
 0x268   : > { %v727_v36 = vpop.trf.xlu0 }
 0x269   : > { %1576 = vmatmul.mubr.msk.f32.gmra.mrb[14].mxu1 %vm762_vm8, %v727_v36 }
 0x26a   : > { %1578 = vmatprep.mubr.msk.f32.mxu1 %vm762_vm8, %v744_v11  ;;  %v759_v41 = vpop.trf.xlu1 }
 0x26d   : > { %1579 = vmatmul.mubr.msk.f32.gmra.mrb[16].mxu1 %vm762_vm8, %v745_v13 }
 0x26e   : > { %1581 = vmatprep.mubr.msk.f32.mxu1 %vm762_vm8, %v746_v15 }
 0x271   : > { %1582 = vmatmul.mubr.msk.f32.gmra.mrb[18].mxu1 %vm762_vm8, %v747_v17 }
 0x272   : > { %1584 = vmatprep.mubr.msk.f32.mxu1 %vm762_vm8, %v748_v20 }
 0x275   : > { %1585 = vmatmul.mubr.msk.f32.gmra.mrb[20].mxu1 %vm762_vm8, %v749_v22 }
 0x276   : > { %1587 = vmatprep.mubr.msk.f32.mxu1 %vm762_vm8, %v750_v25 }
 0x279   : > { %1588 = vmatmul.mubr.msk.f32.gmra.mrb[22].mxu1 %vm762_vm8, %v751_v27 }
 0x27a   : > { %1590 = vmatprep.mubr.msk.f32.mxu1 %vm762_vm8, %v752_v30 }
 0x27d   : > { %1591 = vmatmul.mubr.msk.f32.gmra.mrb[24].mxu1 %vm762_vm8, %v753_v32 }
 0x27e   : > { %1593 = vmatprep.mubr.msk.f32.mxu1 %vm762_vm8, %v754_v35 }
 0x281   : > { %1594 = vmatmul.mubr.msk.f32.gmra.mrb[26].mxu1 %vm762_vm8, %v755_v37 }
 0x282   : > { %1596 = vmatprep.mubr.msk.f32.mxu1 %vm762_vm8, %v756_v38 }
 0x285   : > { %1597 = vmatmul.mubr.msk.f32.gmra.mrb[28].mxu1 %vm762_vm8, %v757_v39 }
 0x286   : > { %1599 = vmatprep.mubr.msk.f32.mxu1 %vm762_vm8, %v758_v40 }
 0x287   : > { %v605_v42 = vpop.permute.xlu1 %604 }
 0x288   : > { %v2254_v43 = vadd.f32 %v2218_v9, %v605_v42  ;;  %v688_v44 = vadd.f32 %v2220_v10, %v605_v42 }
 0x289   : > { %1600 = vmatmul.mubr.msk.f32.gmra.mrb[30].mxu1 %vm762_vm8, %v759_v41 }
 0x290   : > { %v600_v45 = vpop.permute.xlu0 %599 }
 0x291   : > { %v2259_v46 = vadd.f32 %v2211_v6, %v600_v45  ;;  %v682_v47 = vadd.f32 %v2213_v7, %v600_v45 }
 0x293   : > { %v1257_v48 = vpack.c.bf16 %v2254_v43, %v2259_v46  ;;  %v1258_v49 = vpack.c.bf16 %v688_v44, %v682_v47 }
 0x295   : > { %1307 = vmatprep.mubr.bf16.mxu0 %v1258_v49 }
 0x304   : > { %v2264_v50 = vpop.f32.mrb[0].mxu1 }
 0x305   : > { %v2266_v51 = vpop.f32.mrb[1].mxu1 }
 0x30c   : > { %v2268_v52 = vpop.f32.mrb[2].mxu1 }
 0x30d   : > { %v2270_v53 = vpop.f32.mrb[3].mxu1 }
 0x314   : > { %v2272_v54 = vpop.f32.mrb[4].mxu1 }
 0x315   : > { %v1088_v55 = vmax.f32 %v2264_v50, %v2272_v54  ;;  %v2276_v56 = vpop.f32.mrb[5].mxu1 }
 0x316   : > { %v1087_v57 = vmax.f32 %v2266_v51, %v2276_v56 }
 0x31c   : > { %v2280_v58 = vpop.f32.mrb[6].mxu1 }
 0x31d   : > { %v1090_v59 = vmax.f32 %v2268_v52, %v2280_v58  ;;  %v2284_v60 = vpop.f32.mrb[7].mxu1 }
 0x31e   : > { %v1089_v61 = vmax.f32 %v2270_v53, %v2284_v60 }
 0x324   : > { %v2288_v62 = vpop.f32.mrb[8].mxu1 }
 0x325   : > { %v1092_v63 = vmax.f32 %v1088_v55, %v2288_v62  ;;  %v2291_v0 = vpop.f32.mrb[9].mxu1 }
 0x326   : > { %v1091_v1 = vmax.f32 %v1087_v57, %v2291_v0 }
 0x32c   : > { %v2294_v5 = vpop.f32.mrb[10].mxu1 }
 0x32d   : > { %v1094_v6 = vmax.f32 %v1090_v59, %v2294_v5  ;;  %v2297_v7 = vpop.f32.mrb[11].mxu1 }
 0x32e   : > { %v1093_v8 = vmax.f32 %v1089_v61, %v2297_v7 }
 0x334   : > { %v2300_v9 = vpop.f32.mrb[12].mxu1 }
 0x335   : > { %v1096_v10 = vmax.f32 %v1092_v63, %v2300_v9  ;;  %v2303_v2 = vpop.f32.mrb[13].mxu1 }
 0x336   : > { %v1095_v11 = vmax.f32 %v1091_v1, %v2303_v2 }
 0x33c   : > { %v2306_v12 = vpop.f32.mrb[14].mxu1 }
 0x33d   : > { %v1098_v13 = vmax.f32 %v1094_v6, %v2306_v12  ;;  %v2309_v14 = vpop.f32.mrb[15].mxu1 }
 0x33e   : > { %v1097_v15 = vmax.f32 %v1093_v8, %v2309_v14 }
 0x340   : > { %v2312_v16 = vpop.f32.mrb[16].mxu1 }
 0x341   : > { %v1100_v17 = vmax.f32 %v1096_v10, %v2312_v16  ;;  %v2315_v18 = vpop.f32.mrb[17].mxu1 }
 0x342   : > { %v1099_v19 = vmax.f32 %v1095_v11, %v2315_v18 }
 0x344   : > { %v2318_v20 = vpop.f32.mrb[18].mxu1 }
 0x345   : > { %v1102_v21 = vmax.f32 %v1098_v13, %v2318_v20  ;;  %v2321_v22 = vpop.f32.mrb[19].mxu1 }
 0x346   : > { %v1101_v23 = vmax.f32 %v1097_v15, %v2321_v22 }
 0x348   : > { %v2324_v24 = vpop.f32.mrb[20].mxu1 }
 0x349   : > { %v1104_v25 = vmax.f32 %v1100_v17, %v2324_v24  ;;  %v2327_v26 = vpop.f32.mrb[21].mxu1 }
 0x34a   : > { %v1103_v27 = vmax.f32 %v1099_v19, %v2327_v26 }
 0x34c   : > { %v2330_v28 = vpop.f32.mrb[22].mxu1 }
 0x34d   : > { %v1106_v29 = vmax.f32 %v1102_v21, %v2330_v28  ;;  %v2333_v30 = vpop.f32.mrb[23].mxu1 }
 0x34e   : > { %v1105_v31 = vmax.f32 %v1101_v23, %v2333_v30 }
 0x350   : > { %v2336_v32 = vpop.f32.mrb[24].mxu1 }
 0x351   : > { %v1108_v33 = vmax.f32 %v1104_v25, %v2336_v32  ;;  %v2339_v34 = vpop.f32.mrb[25].mxu1 }
 0x352   : > { %v1107_v35 = vmax.f32 %v1103_v27, %v2339_v34 }
 0x354   : > { %v2342_v36 = vpop.f32.mrb[26].mxu1 }
 0x355   : > { %v1110_v37 = vmax.f32 %v1106_v29, %v2342_v36  ;;  %v2345_v38 = vpop.f32.mrb[27].mxu1 }
 0x356   : > { %v1109_v39 = vmax.f32 %v1105_v31, %v2345_v38 }
 0x358   : > { %v2348_v40 = vpop.f32.mrb[28].mxu1 }
 0x359   : > { %v1112_v41 = vmax.f32 %v1108_v33, %v2348_v40  ;;  %v2351_v42 = vpop.f32.mrb[29].mxu1 }
 0x35a   : > { %v1111_v44 = vmax.f32 %v1107_v35, %v2351_v42 }
 0x35c   : > { %v1115_v45 = vmax.f32 %v1111_v44, %v1112_v41  ;;  %v2354_v47 = vpop.f32.mrb[30].mxu1 }
 0x35d   : > { %v1114_v49 = vmax.f32 %v1110_v37, %v2354_v47  ;;  %v2357_v55 = vpop.f32.mrb[31].mxu1 }
 0x35e   : > { %v1113_v57 = vmax.f32 %v1109_v39, %v2357_v55 }
 0x360   : > { %v1116_v59 = vmax.f32 %v1113_v57, %v1114_v49 }
 0x362   : > { %v1117_v61 = vmax.f32 %v1115_v45, %v1116_v59 }
 0x364   : > { %v1118_v63 = vrot.slane %v1117_v61, 4 }
 0x366   : > { %v1119_v1 = vmax.f32 %v1117_v61, %v1118_v63 }
 0x368   : > { %v1120_v6 = vrot.slane %v1119_v1, 2 }
 0x36a   : > { %v1121_v8 = vmax.f32 %v1119_v1, %v1120_v6 }
 0x36c   : > { %v1122_v10 = vrot.slane %v1121_v8, 1 }
 0x36e   : > { %v2360_v11 = vmax.f32 %v1121_v8, %v1122_v10 }
 0x370   : > { %v1124_v13 = vsub.f32 %v2266_v51, %v2360_v11  ;;  %v1125_v15 = vsub.f32 %v2264_v50, %v2360_v11  ;;  %v1126_v17 = vsub.f32 %v2270_v53, %v2360_v11  ;;  %v1127_v19 = vsub.f32 %v2268_v52, %v2360_v11 }
 0x371   : > { %v1128_v21 = vsub.f32 %v2276_v56, %v2360_v11  ;;  %v1129_v23 = vsub.f32 %v2272_v54, %v2360_v11  ;;  %v1130_v25 = vsub.f32 %v2284_v60, %v2360_v11  ;;  %v1131_v51 = vsub.f32 %v2280_v58, %v2360_v11 }
 0x372   : > { %v1132_v50 = vsub.f32 %v2291_v0, %v2360_v11  ;;  %v1133_v53 = vsub.f32 %v2288_v62, %v2360_v11  ;;  %v1134_v52 = vsub.f32 %v2297_v7, %v2360_v11  ;;  %v1135_v56 = vsub.f32 %v2294_v5, %v2360_v11 }
 0x373   : > { %v1136_v54 = vsub.f32 %v2303_v2, %v2360_v11  ;;  %v1137_v60 = vsub.f32 %v2300_v9, %v2360_v11  ;;  %v1138_v58 = vsub.f32 %v2309_v14, %v2360_v11  ;;  %v1139_v0 = vsub.f32 %v2306_v12, %v2360_v11 }
 0x374   : > { %v1140_v62 = vsub.f32 %v2315_v18, %v2360_v11  ;;  %v1141_v7 = vsub.f32 %v2312_v16, %v2360_v11  ;;  %v1142_v5 = vsub.f32 %v2321_v22, %v2360_v11  ;;  %v1143_v2 = vsub.f32 %v2318_v20, %v2360_v11 }
 0x375   : > { %v1144_v9 = vsub.f32 %v2327_v26, %v2360_v11  ;;  %v1145_v14 = vsub.f32 %v2324_v24, %v2360_v11  ;;  %v1146_v12 = vsub.f32 %v2333_v30, %v2360_v11  ;;  %v1147_v18 = vsub.f32 %v2330_v28, %v2360_v11 }
 0x376   : > { %v1148_v16 = vsub.f32 %v2339_v34, %v2360_v11  ;;  %v1149_v22 = vsub.f32 %v2336_v32, %v2360_v11  ;;  %v1150_v20 = vsub.f32 %v2345_v38, %v2360_v11  ;;  %v1151_v26 = vsub.f32 %v2342_v36, %v2360_v11 }
 0x377   : > { %v1152_v27 = vsub.f32 %v2351_v42, %v2360_v11  ;;  %v1153_v29 = vsub.f32 %v2348_v40, %v2360_v11  ;;  %v1154_v31 = vsub.f32 %v2357_v55, %v2360_v11  ;;  %v1155_v33 = vsub.f32 %v2354_v47, %v2360_v11 }
 0x378   : > { %v1156_v35 = vmul.f32 1.442695, %v1124_v13  ;;  %v1158_v37 = vmul.f32 1.442695, %v1125_v15  ;;  %v1160_v39 = vmul.f32 1.442695, %v1126_v17 }
 0x379   : > { %v1162_v41 = vmul.f32 1.442695, %v1127_v19  ;;  %v1164_v44 = vmul.f32 1.442695, %v1128_v21  ;;  %v1166_v45 = vmul.f32 1.442695, %v1129_v23 }
 0x37a   : > { %1730 = vpow2.f32 %v1156_v35  ;;  %v1168_v49 = vmul.f32 1.442695, %v1130_v25  ;;  %v1170_v57 = vmul.f32 1.442695, %v1131_v51  ;;  %v1172_v59 = vmul.f32 1.442695, %v1132_v50 }
 0x37b   : > { %1732 = vpow2.f32 %v1158_v37  ;;  %v1174_v61 = vmul.f32 1.442695, %v1133_v53  ;;  %v1176_v63 = vmul.f32 1.442695, %v1134_v52  ;;  %v1178_v1 = vmul.f32 1.442695, %v1135_v56 }
 0x37c   : > { %1734 = vpow2.f32 %v1160_v39  ;;  %v1180_v6 = vmul.f32 1.442695, %v1136_v54  ;;  %v1182_v8 = vmul.f32 1.442695, %v1137_v60  ;;  %v1184_v13 = vmul.f32 1.442695, %v1138_v58 }
 0x37d   : > { %1736 = vpow2.f32 %v1162_v41  ;;  %v1186_v17 = vmul.f32 1.442695, %v1139_v0  ;;  %v1188_v21 = vmul.f32 1.442695, %v1140_v62  ;;  %v1190_v50 = vmul.f32 1.442695, %v1141_v7 }
 0x37e   : > { %1738 = vpow2.f32 %v1164_v44  ;;  %v1192_v52 = vmul.f32 1.442695, %v1142_v5  ;;  %v1194_v58 = vmul.f32 1.442695, %v1143_v2  ;;  %v1196_v62 = vmul.f32 1.442695, %v1144_v9 }
 0x37f   : > { %1740 = vpow2.f32 %v1166_v45  ;;  %v1198_v5 = vmul.f32 1.442695, %v1145_v14  ;;  %v1200_v2 = vmul.f32 1.442695, %v1146_v12  ;;  %v1202_v24 = vmul.f32 1.442695, %v1147_v18 }
 0x380   : > { %1742 = vpow2.f32 %v1168_v49  ;;  %v1204_v30 = vmul.f32 1.442695, %v1148_v16  ;;  %v1206_v28 = vmul.f32 1.442695, %v1149_v22  ;;  %v1208_v34 = vmul.f32 1.442695, %v1150_v20 }
 0x381   : > { %1744 = vpow2.f32 %v1170_v57  ;;  %v1210_v32 = vmul.f32 1.442695, %v1151_v26  ;;  %v1212_v38 = vmul.f32 1.442695, %v1152_v27  ;;  %v1214_v36 = vmul.f32 1.442695, %v1153_v29 }
 0x382   : > { %1746 = vpow2.f32 %v1172_v59 }
 0x383   : > { %1748 = vpow2.f32 %v1174_v61 }
 0x384   : > { %v2426_v10 = vpop.eup %1730  ;;  %1750 = vpow2.f32 %v1176_v63 }
 0x385   : > { %v2428_v15 = vpop.eup %1732  ;;  %1752 = vpow2.f32 %v1178_v1  ;;  %v1216_v1 = vmul.f32 1.442695, %v1154_v31 }
 0x386   : > { %v2430_v19 = vpop.eup %1734  ;;  %1754 = vpow2.f32 %v1180_v6  ;;  %v1220_v23 = vadd.f32 %v2428_v15, %v2426_v10  ;;  %v1259_v25 = vpack.c.bf16 %v2428_v15, %v2426_v10 }
 0x387   : > { %v2436_v51 = vpop.eup %1736  ;;  %1756 = vpow2.f32 %v1182_v8  ;;  %v1218_v8 = vmul.f32 1.442695, %v1155_v33 }
 0x388   : > { %v2438_v53 = vpop.eup %1738  ;;  %1758 = vpow2.f32 %v1184_v13  ;;  %v1221_v56 = vadd.f32 %v2430_v19, %v1220_v23  ;;  %v1260_v54 = vpack.c.bf16 %v2436_v51, %v2430_v19 }
 0x389   : > { %v2443_v60 = vpop.eup %1740  ;;  %1760 = vpow2.f32 %v1186_v17 }
 0x38a   : > { %v2445_v0 = vpop.eup %1742  ;;  %1762 = vpow2.f32 %v1188_v21  ;;  %v1222_v35 = vadd.f32 %v2436_v51, %v1221_v56  ;;  %v1261_v7 = vpack.c.bf16 %v2443_v60, %v2438_v53 }
 0x38b   : > { %v2450_v37 = vpop.eup %1744  ;;  %1764 = vpow2.f32 %v1190_v50 }
 0x38c   : > { %v2455_v39 = vpop.eup %1746  ;;  %1766 = vpow2.f32 %v1192_v52  ;;  %v1223_v9 = vadd.f32 %v2438_v53, %v1222_v35  ;;  %v1262_v41 = vpack.c.bf16 %v2450_v37, %v2445_v0 }
 0x38d   : > { %v2463_v44 = vpop.eup %1748  ;;  %1768 = vpow2.f32 %v1194_v58 }
 0x38e   : > { %v2468_v14 = vpop.eup %1750  ;;  %1770 = vpow2.f32 %v1196_v62  ;;  %v1224_v12 = vadd.f32 %v2443_v60, %v1223_v9  ;;  %v1263_v45 = vpack.c.bf16 %v2463_v44, %v2455_v39 }
 0x38f   : > { %v2476_v49 = vpop.eup %1752  ;;  %1772 = vpow2.f32 %v1198_v5 }
 0x390   : > { %v2481_v18 = vpop.eup %1754  ;;  %1774 = vpow2.f32 %v1200_v2  ;;  %v1225_v16 = vadd.f32 %v2445_v0, %v1224_v12  ;;  %v1264_v57 = vpack.c.bf16 %v2476_v49, %v2468_v14 }
 0x391   : > { %v2489_v59 = vpop.eup %1756  ;;  %1776 = vpow2.f32 %v1202_v24 }
 0x392   : > { %v2494_v22 = vpop.eup %1758  ;;  %1778 = vpow2.f32 %v1204_v30  ;;  %v1226_v20 = vadd.f32 %v2450_v37, %v1225_v16  ;;  %v1265_v61 = vpack.c.bf16 %v2489_v59, %v2481_v18 }
 0x393   : > { %v2502_v63 = vpop.eup %1760  ;;  %1780 = vpow2.f32 %v1206_v28 }
 0x394   : > { %v1763_v26 = vpop.eup %1762  ;;  %1782 = vpow2.f32 %v1208_v34  ;;  %v1227_v42 = vadd.f32 %v2455_v39, %v1226_v20  ;;  %v1266_v27 = vpack.c.bf16 %v2502_v63, %v2494_v22 }
 0x395   : > { %v1765_v6 = vpop.eup %1764  ;;  %1784 = vpow2.f32 %v1210_v32 }
 0x396   : > { %v1767_v13 = vpop.eup %1766  ;;  %1786 = vpow2.f32 %v1212_v38  ;;  %v1228_v40 = vadd.f32 %v2463_v44, %v1227_v42  ;;  %v1267_v29 = vpack.c.bf16 %v1765_v6, %v1763_v26 }
 0x397   : > { %v1769_v17 = vpop.eup %1768  ;;  %1788 = vpow2.f32 %v1214_v36 }
 0x398   : > { %v1771_v55 = vpop.eup %1770  ;;  %1790 = vpow2.f32 %v1216_v1  ;;  %v1229_v31 = vadd.f32 %v2468_v14, %v1228_v40  ;;  %1523 = vmatprep.subr.bf16.mxu0 %v1267_v29  ;;  %v1268_v21 = vpack.c.bf16 %v1769_v17, %v1767_v13 }
 0x399   : > { %v1773_v23 = vpop.eup %1772  ;;  %1792 = vpow2.f32 %v1218_v8  ;;  %1524 = vmatpush3.bf16.msra.mxu0 %v1259_v25 }
 0x39a   : > { %v1775_v47 = vpop.eup %1774  ;;  %v1230_v11 = vadd.f32 %v2476_v49, %v1229_v31  ;;  %1525 = vmatprep.subr.bf16.mxu0 %v1268_v21  ;;  %v1269_v33 = vpack.c.bf16 %v1773_v23, %v1771_v55 }
 0x39b   : > { %v1777_v50 = vpop.eup %1776 }
 0x39c   : > { %v1779_v52 = vpop.eup %1778  ;;  %v1231_v56 = vadd.f32 %v2481_v18, %v1230_v11  ;;  %v1270_v58 = vpack.c.bf16 %v1777_v50, %v1775_v47 }
 0x39d   : > { %v1781_v62 = vpop.eup %1780  ;;  %1526 = vmatpush3.bf16.msra.mxu0 %v1260_v54 }
 0x39e   : > { %v1783_v35 = vpop.eup %1782  ;;  %v1232_v5 = vadd.f32 %v2489_v59, %v1231_v56  ;;  %1527 = vmatprep.subr.bf16.mxu0 %v1269_v33  ;;  %v1271_v10 = vpack.c.bf16 %v1781_v62, %v1779_v52 }
 0x39f   : > { %v1785_v15 = vpop.eup %1784 }
 0x3a0   : > { %v1787_v25 = vpop.eup %1786  ;;  %v1233_v2 = vadd.f32 %v2494_v22, %v1232_v5  ;;  %v1272_v9 = vpack.c.bf16 %v1785_v15, %v1783_v35 }
 0x3a1   : > { %v1789_v24 = vpop.eup %1788  ;;  %1528 = vmatpush3.bf16.msra.mxu0 %v1261_v7 }
 0x3a2   : > { %v1791_v30 = vpop.eup %1790  ;;  %v1234_v12 = vadd.f32 %v2502_v63, %v1233_v2  ;;  %1529 = vmatprep.subr.bf16.mxu0 %v1270_v58  ;;  %v1273_v19 = vpack.c.bf16 %v1789_v24, %v1787_v25 }
 0x3a3   : > { %v1793_v51 = vpop.eup %1792 }
 0x3a4   : > { %v1235_v54 = vadd.f32 %v1763_v26, %v1234_v12  ;;  %v1274_v28 = vpack.c.bf16 %v1793_v51, %v1791_v30  ;;  %v1320_v26 = vstv %s1317_s27  ;;  %s1826_s27 = scalar_lea.vmem %s2551_s20, 256 }
 0x3a5   : > { %1530 = vmatpush3.bf16.msra.mxu0 %v1262_v41  ;;  %p1827_p7 = scmp.ne.s32.totalorder %s2551_s20, %s1826_s27  ;;  %p1834_p1 = scmp.lt.s32.totalorder %s1832_s25, %s1826_s27 }
 0x3a6   : > { %v1236_v34 = vadd.f32 %v1765_v6, %v1235_v54  ;;  %1531 = vmatprep.subr.bf16.mxu0 %v1271_v10 }
 0x3a7   : > { %p1828_p2 = pnand %p1827_p7, %p2648_p12  ;;  %p1835_p6 = por %p1834_p1, %p1833_p0 }
 0x3a8   : > { %v1237_v16 = vadd.f32 %v1767_v13, %v1236_v34 }
 0x3a9   : > { %1532 = vmatpush3.bf16.msra.mxu0 %v1263_v45  ;;  %p1829_p4 = pneg %p1828_p2 }
 0x3aa   : > { %v1238_v53 = vadd.f32 %v1769_v17, %v1237_v16  ;;  %1533 = vmatprep.subr.bf16.mxu0 %v1272_v9 }
 0x3ab   : > { %p1836_p9 = pnand %p1835_p6, %p1829_p4 }
 0x3ac   : > { %v1239_v60 = vadd.f32 %v1771_v55, %v1238_v53 }
 0x3ad   : > { %1534 = vmatpush3.bf16.msra.mxu0 %v1264_v57 }
 0x3ae   : > { %v1240_v7 = vadd.f32 %v1773_v23, %v1239_v60  ;;  %1535 = vmatprep.subr.bf16.mxu0 %v1273_v19 }
 0x3b0   : > { %v1241_v32 = vadd.f32 %v1775_v47, %v1240_v7 }
 0x3b1   : > { %1536 = vmatpush3.bf16.msra.mxu0 %v1265_v61 }
 0x3b2   : > { %v1242_v0 = vadd.f32 %v1777_v50, %v1241_v32  ;;  %1537 = vmatprep.subr.bf16.mxu0 %v1274_v28 }
 0x3b4   : > { %v1243_v37 = vadd.f32 %v1779_v52, %v1242_v0 }
 0x3b5   : > { %1538 = vmatpush3.bf16.msra.mxu0 %v1266_v27 }
 0x3b6   : > { %v1244_v39 = vadd.f32 %v1781_v62, %v1243_v37 }
 0x3b8   : > { %v1245_v41 = vadd.f32 %v1783_v35, %v1244_v39  ;;  %1308 = vmatmul.mubr.bf16.vlgmr.msra.gmra.mrb[8].mxu0 %v1257_v48 }
 0x3ba   : > { %v1246_v44 = vadd.f32 %v1785_v15, %v1245_v41 }
 0x3bc   : > { %v1247_v14 = vadd.f32 %v1787_v25, %v1246_v44 }
 0x3be   : > { %v1248_v45 = vadd.f32 %v1789_v24, %v1247_v14 }
 0x3c0   : > { %v1249_v49 = vadd.f32 %v1791_v30, %v1248_v45 }
 0x3c2   : > { %v1250_v57 = vadd.f32 %v1793_v51, %v1249_v49 }
 0x3c4   : > { %v1251_v22 = vrot.slane %v1250_v57, 4 }
 0x3c6   : > { %v1252_v18 = vadd.f32 %v1251_v22, %v1250_v57 }
 0x3c8   : > { %v1253_v59 = vrot.slane %v1252_v18, 2 }
 0x3ca   : > { %v1254_v38 = vadd.f32 %v1253_v59, %v1252_v18 }
 0x3cc   : > { %v1255_v20 = vrot.slane %v1254_v38, 1 }
 0x3ce   : > { %v1256_v61 = vadd.f32 %v1255_v20, %v1254_v38 }
 0x3d0   : > { %1794 = vrcp.f32 %v1256_v61 }
 0x3da   : > { %v1795_v36 = vpop.eup %1794 }
 0x48b   : > { %v1539_v63 = vpop.f32.mrb[8].mxu0 }
 0x48c   : > { %v1540_v43 = vpop.f32.mrb[9].mxu0 }
 0x48d   : > { %v1541_v46 = vadd.f32 %v1540_v43, %v1539_v63  ;;  %v1542_v48 = vpop.f32.mrb[10].mxu0 }
 0x48e   : > { %v1543_v1 = vpop.f32.mrb[11].mxu0 }
 0x48f   : > { %v1318_v42 = vmul.f32 %v1795_v36, %v1541_v46  ;;  %v1544_v27 = vadd.f32 %v1543_v1, %v1542_v48 }
 0x491   : > { %v1321_v6 = vmul.f32 %v1320_v26, %v1318_v42  ;;  %v1319_v8 = vmul.f32 %v1795_v36, %v1544_v27 }
 0x493   : > { %v1323_v13 = vadd.f32 %v1321_v6, %v2167_v3  ;;  %v1322_v40 = vmul.f32 %v1320_v26, %v1319_v8 }
 0x495   : > { %1325 = vst [vmem:[%s338_s18] sm:$0xff] %v1323_v13  ;;  %v1324_v29 = vadd.f32 %v1322_v40, %v2169_v4 }
 0x497   : > { %1326 = vst [vmem:[%s338_s18 + $0x8] sm:$0xff] %v1324_v29 }
 0x498   : > { %1839 = shalt.err (!%p1836_p9)
}
 0x499   : > { %s1840_s8 = scalar_lea.hbm %s2557_s23, 256  ;;  %s1844_s14 = scalar_lea.hbm %s2647_s17, 1024 }
 0x49a   : > { %p1841_p3 = scmp.ne.s32.totalorder %s2557_s23, %s1840_s8  ;;  %p1845_p5 = scmp.lt.u32.totalorder %s2557_s23, %s2647_s17 }
 0x49b   : > { %p1846_p8 = scmp.lt.u32.totalorder %s1844_s14, %s1840_s8  ;;  %p1848_p7 = scmp.lt.u32.totalorder %s1840_s8, %s2557_s23 }
 0x49c   : > { %p1842_p11 = pnand %p1841_p3, %p2648_p12 }
 0x49d   : > { %p1847_p10 = por %p1846_p8, %p1845_p5 }
 0x49e   : > { %p1843_p13 = pneg %p1842_p11 }
 0x49f   : > { %p1849_p2 = por %p1848_p7, %p1847_p10 }
 0x4a1   : > { %p1850_p4 = pnand %p1849_p2, %p1843_p13 }
 0x4a3   : > { %1853 = shalt.err (!%p1850_p4)
}
 0x4a4   : > { %s1962_s27 = smov 128   ;;  %s1963_s15 = smov 256  }
 0x4a5   : > { %s1964_s24 = smov 8  }
 0x4a6   : > { %1615 = dma.vmem_to_hbm [thread:$0]  (%p2648_p12), %s2551_s20, 256, %s2557_s23, %s2559_s26, %s1962_s27, %s1963_s15, %s1964_s24  }
 0x4a7 PF: > { %p1626_p0 = scmp.ge.s32.totalorder %s1948_s16, 2  ;;  %s1357_s25 = sand.u32 1, %s1908_s29  }
 0x4a8   : > { %p2649_p1 = scmp.ne.s32.totalorder %s2643_s0, 0  ;;  %s1358_s8 = scalar_lea.sflag [#allocation5], %s1357_s25 }
 0x4aa   : > { %p1622_p6 = pnand %p1626_p0, %p2649_p1 }
 0x4ac   : > { %1903 = dma.done.wait (!%p1622_p6), %s1358_s8, 256  }
 0x4ad   : > { %1905 = vsyncadd (!%p1622_p6), %s1358_s8, 4294967040  ;;  %s25_s16 = sadd.s32 1, %s1948_s16   ;;  %s2650_s28 = smov %s2100_s10 }
 0x4ae   : > { %p22_p9 = scmp.ge.s32.totalorder %s25_s16, 6   ;;  %s2651_s13 = sld [smem:[#allocation9_spill]] }
 0x4af   : > { %s2652_s14 = sld [smem:[#allocation10_spill]]  ;;  %s2653_s0 = sld [smem:[#allocation11_spill]] }
 0x4b0   : > { %s2654_s15 = sld [smem:[#allocation12_spill]]  ;;  %s2655_s29 = smov %s1912_s30 }
 0x4b1   : > { %s2656_s30 = smov %s1916_s9  ;;  %s2657_s9 = smov %s2103_s19 }
 0x4b2   : > { %s2658_s10 = smov %s1924_s11  ;;  %s2659_s11 = smov %s1928_s12 }
 0x4b3   : > { %s2660_s12 = smov %s2650_s28  ;;  %24 = sbr.rel (!%p22_p9) target bundleno = 12 (0xc), region = 98 }
 0x4ba   :  { %1363 = vsyncpa [#allocation4], 1 }
 0x4bb   :  { %1365 = vsyncpa [#allocation4 + $0x1], 1 }
 0x4bc   :  { %1366 = vsyncpa [#allocation5], 1 }
 0x4bd   :  { %1368 = vsyncpa [#allocation5 + $0x1], 1 }

</bundles_post_ra>
